<compile_context>
chip_gen: v7x
topology: tpu7x:2x2x1
jax: 0.10.0
libtpu: 0.0.40
codegen_flags: <defaults>
</compile_context>

<pallas_src>
import functools
import math

import jax
import jax.numpy as jnp
from jax.experimental import pallas as pl
from jax.experimental.pallas import tpu as pltpu


def _row_tile(m, cap=256):
    """Row-tile size: full M when small, else a divisor of M that is a
    multiple of 8 (satisfies the (8,128) sublane constraint)."""
    if m <= cap:
        return m
    for t in (cap, 128, 64, 32, 16, 8):
        if m % t == 0:
            return t
    return m  # fallback: single block (fine on 128 MiB VMEM parts)


# ----------------------------------------------------------------------------
# Fused  (optional L2-normalize)  ->  Linear(+bias)  ->  (optional /temp)
# ----------------------------------------------------------------------------
def _predictor_kernel(x_ref, w_ref, b_ref, o_ref, *, normalize, inv_temp, eps):
    x = x_ref[...]                                            # (tm, K) f32
    # bf16 x bf16 matmul on the MXU with f32 accumulation.
    acc = jnp.dot(x.astype(w_ref.dtype), w_ref[...],
                  preferred_element_type=jnp.float32)         # (tm, N) f32

    if normalize:
        # F.normalize: x / max(||x||_2, eps).  Normalization is a per-row
        # scale, so it commutes with the (linear) matmul and is applied here.
        ss = jnp.sum(x * x, axis=1, keepdims=True)            # (tm, 1) f32
        inv_norm = jnp.minimum(jax.lax.rsqrt(ss), 1.0 / eps)  # clamped rsqrt (EUP)
        out = (acc * inv_norm + b_ref[...]) * inv_temp
    else:
        out = acc + b_ref[...]

    o_ref[...] = out.astype(o_ref.dtype)


def predictor_forward(x, w, b, *, temp=0.05, norm_feature=True,
                      reverse=False, eta=0.1, weight_dtype=jnp.bfloat16):
    """x: (M, K) f32, w: (K, N) f32 (= W_pt.T), b: (1, N) f32 -> (M, N) f32."""
    # TODO(synk): grad_reverse (RevGrad) only scales the *gradient* by -eta;
    # the forward pass is an identity, so `reverse`/`eta` are no-ops here.
    del reverse, eta

    M, K = x.shape
    Kw, N = w.shape
    assert K == Kw and b.shape == (1, N)

    tm = _row_tile(M)
    grid = (M // tm if M % tm == 0 else 1,)   # tm divides M or tm == M

    w = w.astype(weight_dtype)                # halve the dominant HBM stream

    kernel = functools.partial(
        _predictor_kernel,
        normalize=bool(norm_feature),
        inv_temp=(1.0 / temp) if norm_feature else 1.0,
        eps=1e-12,
    )

    return pl.pallas_call(
        kernel,
        out_shape=jax.ShapeDtypeStruct((M, N), jnp.float32),
        grid_spec=pltpu.PrefetchScalarGridSpec(
            num_scalar_prefetch=0,
            grid=grid,
            in_specs=[
                pl.BlockSpec((tm, K), lambda m: (m, 0)),   # activations (row tiles)
                pl.BlockSpec((K, N), lambda m: (0, 0)),    # full weight, resident
                pl.BlockSpec((1, N), lambda m: (0, 0)),    # bias, resident
            ],
            out_specs=pl.BlockSpec((tm, N), lambda m: (m, 0)),
        ),
        compiler_params=pltpu.CompilerParams(
            dimension_semantics=("parallel",),             # shards M tiles on v7x
            vmem_limit_bytes=48 * 1024 * 1024,
        ),
    )(x, w, b)


# ----------------------------------------------------------------------------
# Parameters (deterministic synthetic init, matching init_weights for Linear)
# ----------------------------------------------------------------------------
def init_params(key, inc=4096, num_class=64):
    # Linear -> xavier_normal_ weight, zero bias.  Stored as (in, out) = W_pt.T.
    std = math.sqrt(2.0 / (inc + num_class))
    w = jax.random.normal(key, (inc, num_class), jnp.float32) * std
    b = jnp.zeros((1, num_class), jnp.float32)
    return w, b


if __name__ == "__main__":
    BATCH, INC, NUM_CLASS, TEMP = 2, 4096, 64, 0.05

    key = jax.random.PRNGKey(0)
    k_in, k_w = jax.random.split(key)
    x = jax.random.normal(k_in, (BATCH, INC), jnp.float32)
    w, b = init_params(k_w, INC, NUM_CLASS)

    # norm_feature=1 path (the module default)
    out = jax.block_until_ready(
        predictor_forward(x, w, b, temp=TEMP, norm_feature=True))

    # norm_feature=0 path
    out_plain = jax.block_until_ready(
        predictor_forward(x, w, b, temp=TEMP, norm_feature=False))

    # Pure-JAX f32 reference (same math as the PyTorch forward)
    xn = x / jnp.maximum(jnp.sqrt(jnp.sum(x * x, axis=1, keepdims=True)), 1e-12)
    ref = (xn @ w + b) / TEMP
    ref_plain = x @ w + b

    assert out.shape == (BATCH, NUM_CLASS), out.shape
    assert bool(jnp.isfinite(out).all())
    assert bool(jnp.allclose(out, ref, rtol=5e-2, atol=5e-2)), \
        float(jnp.max(jnp.abs(out - ref)))
    assert bool(jnp.allclose(out_plain, ref_plain, rtol=5e-2, atol=5e-2)), \
        float(jnp.max(jnp.abs(out_plain - ref_plain)))
    print("KERNEL_OK")
</pallas_src>

<mosaic_0001>
module attributes {stable_mosaic.version = 11 : i64} {
  func.func @_predictor_kernel(%arg0: i32, %arg1: memref<2x4096xf32, #tpu.memory_space<vmem>>, %arg2: memref<4096x64xbf16, #tpu.memory_space<vmem>>, %arg3: memref<1x64xf32, #tpu.memory_space<vmem>>, %arg4: memref<2x64xf32, #tpu.memory_space<vmem>>) attributes {dimension_semantics = [#tpu.dimension_semantics<parallel>], iteration_bounds = array<i64: 1>, scalar_prefetch = 0 : i64, scratch_operands = 0 : i64, tpu.core_type = #tpu.core_type<tc>, window_params = [{transform_indices = @transform_0, window_bounds = array<i64: 2, 4096>}, {pipeline_mode = #tpu.pipeline_mode<synchronous>, transform_indices = @transform_1, window_bounds = array<i64: 4096, 64>}, {pipeline_mode = #tpu.pipeline_mode<synchronous>, transform_indices = @transform_2, window_bounds = array<i64: 1, 64>}, {transform_indices = @transform_3, window_bounds = array<i64: 2, 64>}]} {
    %c0 = arith.constant 0 : index
    %c0_0 = arith.constant 0 : index
    %0 = vector.load %arg1[%c0, %c0_0] : memref<2x4096xf32, #tpu.memory_space<vmem>>, vector<2x4096xf32>
    %1 = arith.truncf %0 : vector<2x4096xf32> to vector<2x4096xbf16>
    %c0_1 = arith.constant 0 : index
    %c0_2 = arith.constant 0 : index
    %2 = vector.load %arg2[%c0_1, %c0_2] : memref<4096x64xbf16, #tpu.memory_space<vmem>>, vector<4096x64xbf16>
    %cst = arith.constant dense<0.000000e+00> : vector<2x64xf32>
    %3 = tpu.matmul %1, %2, %cst {dimension_numbers = #tpu.dot_dimension_numbers<[1], [0], [0], [1], [0, 0, 1, 1], [], []>} : vector<2x4096xbf16>, vector<4096x64xbf16>, vector<2x64xf32> -> vector<2x64xf32>
    %4 = arith.mulf %0, %0 : vector<2x4096xf32>
    %cst_3 = arith.constant dense<0.000000e+00> : vector<2xf32>
    %5 = vector.multi_reduction <add>, %4, %cst_3 [1] : vector<2x4096xf32> to vector<2xf32>
    %6 = vector.shape_cast %5 : vector<2xf32> to vector<2x1xf32>
    %7 = math.rsqrt %6 : vector<2x1xf32>
    %cst_4 = arith.constant 9.99999995E+11 : f32
    %8 = vector.broadcast %cst_4 : f32 to vector<2x1xf32>
    %9 = arith.minimumf %7, %8 : vector<2x1xf32>
    %10 = vector.broadcast %9 : vector<2x1xf32> to vector<2x64xf32>
    %11 = arith.mulf %3, %10 : vector<2x64xf32>
    %c0_5 = arith.constant 0 : index
    %c0_6 = arith.constant 0 : index
    %12 = vector.load %arg3[%c0_5, %c0_6] : memref<1x64xf32, #tpu.memory_space<vmem>>, vector<1x64xf32>
    %13 = vector.broadcast %12 : vector<1x64xf32> to vector<2x64xf32>
    %14 = arith.addf %11, %13 : vector<2x64xf32>
    %cst_7 = arith.constant 2.000000e+01 : f32
    %15 = vector.broadcast %cst_7 : f32 to vector<2x64xf32>
    %16 = arith.mulf %14, %15 : vector<2x64xf32>
    %c0_8 = arith.constant 0 : index
    %c0_9 = arith.constant 0 : index
    %17 = vector.load %arg4[%c0_8, %c0_9] : memref<2x64xf32, #tpu.memory_space<vmem>>, vector<2x64xf32>
    tpu.vector_store %arg4[%c0_8, %c0_9], %16 {strides = array<i32>} : memref<2x64xf32, #tpu.memory_space<vmem>>, vector<2x64xf32>,
    return
  }
  func.func @transform_0(%arg0: i32) -> (i32, i32) {
    %c0_i32 = arith.constant 0 : i32
    %c0_i32_0 = arith.constant 0 : i32
    return %arg0, %c0_i32 : i32, i32
  }
  func.func @transform_1(%arg0: i32) -> (i32, i32) {
    %c0_i32 = arith.constant 0 : i32
    %c0_i32_0 = arith.constant 0 : i32
    %c0_i32_1 = arith.constant 0 : i32
    return %c0_i32, %c0_i32_0 : i32, i32
  }
  func.func @transform_2(%arg0: i32) -> (i32, i32) {
    %c0_i32 = arith.constant 0 : i32
    %c0_i32_0 = arith.constant 0 : i32
    %c0_i32_1 = arith.constant 0 : i32
    return %c0_i32, %c0_i32_0 : i32, i32
  }
  func.func @transform_3(%arg0: i32) -> (i32, i32) {
    %c0_i32 = arith.constant 0 : i32
    %c0_i32_0 = arith.constant 0 : i32
    return %arg0, %c0_i32 : i32, i32
  }
}

</mosaic_0001>

<bundles_post_ra>
// kernel: tpu_custom_call.1
= control target key start
LH: loop header
LB: loop body
LE: loop exit
PB: predicated region body
PF: predicated region fallthrough
CT: control target
= control target key end

     0   :  { %v36_v28 = vlaneseq  ;;  %v4099_v36 = vmov 1983009808   ;;  %vm3104_vm0 = vcmask 1041408   ;;  %s5013_s0 = inlined_call_operand.vmem [shape: f32[2,4096], index: 0, kind: input, shape index: {}]   ;;  %s5014_s1 = inlined_call_operand.vmem [shape: bf16[4096,64], index: 1, kind: input, shape index: {}]   ;;  %s5015_s2 = inlined_call_operand.vmem [shape: f32[1,64], index: 2, kind: input, shape index: {}]   ;;  %s5016_s3 = inlined_call_operand.hbm [shape: f32[2,64], index: 3, kind: output, shape index: {}]  }
   0x1   :  { %v3809_v0 = vld [vmem:[%s5014_s1 + $0x40] sm:$0xff]   ;;  %v3813_v4 = vld [vmem:[%s5014_s1 + $0x48] sm:$0xff]   ;;  %v3817_v8 = vld [vmem:[%s5014_s1 + $0x50] sm:$0xff]   ;;  %v34_v37 = vunpack.c.l.s4 %v4099_v36 }
   0x2   :  { %v3810_v1 = vld [vmem:[%s5014_s1 + $0xc0] sm:$0xff]   ;;  %3455 = vmatprep.subr.bf16.mxu0 %v3809_v0  ;;  %v3814_v5 = vld [vmem:[%s5014_s1 + $0xc8] sm:$0xff]   ;;  %v3818_v9 = vld [vmem:[%s5014_s1 + $0xd0] sm:$0xff]   ;;  %v37_v33 = vshrl.u32 %v36_v28, 7 }
   0x3   :  { %v3811_v2 = vld [vmem:[%s5014_s1] sm:$0xff]   ;;  %3477 = vmatprep.subr.bf16.mxu1 %v3810_v1  ;;  %v3815_v6 = vld [vmem:[%s5014_s1 + $0x8] sm:$0xff]   ;;  %v3819_v10 = vld [vmem:[%s5014_s1 + $0x10] sm:$0xff]   ;;  %v35_v39 = vunpack.c.0.s8 %v34_v37 }
   0x4   :  { %v3812_v3 = vld [vmem:[%s5014_s1 + $0x80] sm:$0xff]   ;;  %3456 = vmatpush3.bf16.msra.mxu0 %v3811_v2  ;;  %v3816_v7 = vld [vmem:[%s5014_s1 + $0x88] sm:$0xff]   ;;  %v3820_v11 = vld [vmem:[%s5014_s1 + $0x90] sm:$0xff]  }
   0x5   :  { %3478 = vmatpush3.bf16.msra.mxu1 %v3812_v3  ;;  %3457 = vmatprep.subr.bf16.mxu0 %v3813_v4  ;;  %v3821_v12 = vld [vmem:[%s5014_s1 + $0x58] sm:$0xff]   ;;  %v3825_v16 = vld [vmem:[%s5014_s1 + $0x60] sm:$0xff]   ;;  %v3829_v20 = vld [vmem:[%s5014_s1 + $0x68] sm:$0xff]   ;;  %v4226_v41 = vsub.s32 %v35_v39, %v37_v33 }
   0x6   :  { %3479 = vmatprep.subr.bf16.mxu1 %v3814_v5  ;;  %v3822_v13 = vld [vmem:[%s5014_s1 + $0xd8] sm:$0xff]   ;;  %v3826_v17 = vld [vmem:[%s5014_s1 + $0xe0] sm:$0xff]   ;;  %v3830_v21 = vld [vmem:[%s5014_s1 + $0xe8] sm:$0xff]  }
   0x7   :  { %v3823_v14 = vld [vmem:[%s5014_s1 + $0x18] sm:$0xff]   ;;  %v3827_v18 = vld [vmem:[%s5014_s1 + $0x20] sm:$0xff]   ;;  %v3831_v22 = vld [vmem:[%s5014_s1 + $0x28] sm:$0xff]  }
   0x8   :  { %3458 = vmatpush3.bf16.msra.mxu0 %v3815_v6  ;;  %v3824_v15 = vld [vmem:[%s5014_s1 + $0x98] sm:$0xff]   ;;  %v3828_v19 = vld [vmem:[%s5014_s1 + $0xa0] sm:$0xff]   ;;  %v3832_v23 = vld [vmem:[%s5014_s1 + $0xa8] sm:$0xff]  }
   0x9   :  { %3480 = vmatpush3.bf16.msra.mxu1 %v3816_v7  ;;  %3459 = vmatprep.subr.bf16.mxu0 %v3817_v8  ;;  %v3833_v24 = vld [vmem:[%s5014_s1 + $0x70] sm:$0xff]   ;;  %v3837_v29 = vld [vmem:[%s5014_s1 + $0x78] sm:$0xff]   ;;  %v16_v34 = vld [vmem:[%s5013_s0] sm:$0xff] }
   0xa   :  { %3481 = vmatprep.subr.bf16.mxu1 %v3818_v9  ;;  %v3834_v25 = vld [vmem:[%s5014_s1 + $0xf0] sm:$0xff]   ;;  %v3838_v30 = vld [vmem:[%s5014_s1 + $0xf8] sm:$0xff]   ;;  %v3842_v35 = vld [vmem:[%s5014_s1 + $0x140] sm:$0xff]   ;;  %v32_v40 = vcombine.high %v16_v34, %v16_v34  ;;  %v39_v42 = vrot.slane %v16_v34, %v4226_v41  ;;  %v2920_v50 = vmul.f32 %v16_v34, %v16_v34 }
   0xb   :  { %v3835_v26 = vld [vmem:[%s5014_s1 + $0x30] sm:$0xff]   ;;  %v3839_v31 = vld [vmem:[%s5014_s1 + $0x38] sm:$0xff]   ;;  %v3843_v38 = vld [vmem:[%s5014_s1 + $0x1c0] sm:$0xff]  }
   0xc   :  { %3460 = vmatpush3.bf16.msra.mxu0 %v3819_v10  ;;  %v3836_v27 = vld [vmem:[%s5014_s1 + $0xb0] sm:$0xff]   ;;  %v3840_v32 = vld [vmem:[%s5014_s1 + $0xb8] sm:$0xff]   ;;  %v46_v43 = vrot.slane %v32_v40, %v4226_v41  ;;  %v47_v44 = vcombine.high %v39_v42, %v39_v42  ;;  %v3844_v45 = vld [vmem:[%s5014_s1 + $0x100] sm:$0xff]   ;;  %v200_v47 = vpack.c.bf16 %v39_v42, %v39_v42  ;;  %v2943_v57 = vrot.slane %v2920_v50, %v4226_v41 }
   0xd   :  { %3482 = vmatpush3.bf16.msra.mxu1 %v3820_v11  ;;  %3461 = vmatprep.subr.bf16.mxu0 %v3821_v12  ;;  %v3845_v48 = vld [vmem:[%s5014_s1 + $0x180] sm:$0xff]   ;;  %v3846_v52 = vld [vmem:[%s5014_s1 + $0x148] sm:$0xff]   ;;  %v3850_v58 = vld [vmem:[%s5014_s1 + $0x150] sm:$0xff]   ;;  %v2936_v62 = vcombine.high %v2920_v50, %v2920_v50 }
   0xe   :  { %3483 = vmatprep.subr.bf16.mxu1 %v3822_v13  ;;  %v48_v46 = vcombine.high %v46_v43, %v46_v43  ;;  %v201_v49 = vpack.c.bf16 %v47_v44, %v47_v44  ;;  %v202_v51 = vpack.c.bf16 %v46_v43, %v46_v43  ;;  %v3847_v53 = vld [vmem:[%s5014_s1 + $0x1c8] sm:$0xff]   ;;  %v3851_v59 = vld [vmem:[%s5014_s1 + $0x1d0] sm:$0xff]   ;;  %v2951_v63 = vcombine.high %v2943_v57, %v2943_v57  ;;  %v3854_v0 = vld [vmem:[%s5014_s1 + $0x158] sm:$0xff]  }
   0xf   :  { %v3848_v55 = vld [vmem:[%s5014_s1 + $0x108] sm:$0xff]   ;;  %v3852_v60 = vld [vmem:[%s5014_s1 + $0x110] sm:$0xff]   ;;  %v3855_v1 = vld [vmem:[%s5014_s1 + $0x1d8] sm:$0xff]   ;;  %v3105_v3 = vsel %vm3104_vm0, %v2943_v57, 0.0  ;;  %v2950_v5 = vrot.slane %v2936_v62, %v4226_v41 }
  0x10   :  { %3462 = vmatpush3.bf16.msra.mxu0 %v3823_v14  ;;  %v203_v54 = vpack.c.bf16 %v48_v46, %v48_v46  ;;  %2312 = vmatprep.mubr.bf16.mxu0 %v201_v49  ;;  %v3849_v56 = vld [vmem:[%s5014_s1 + $0x188] sm:$0xff]   ;;  %v3853_v61 = vld [vmem:[%s5014_s1 + $0x190] sm:$0xff]   ;;  %v3856_v2 = vld [vmem:[%s5014_s1 + $0x118] sm:$0xff]   ;;  %v3106_v6 = vsel %vm3104_vm0, %v2951_v63, 0.0 }
  0x11   :  { %3484 = vmatpush3.bf16.msra.mxu1 %v3824_v15  ;;  %3463 = vmatprep.subr.bf16.mxu0 %v3825_v16  ;;  %v3857_v4 = vld [vmem:[%s5014_s1 + $0x198] sm:$0xff]   ;;  %v3858_v7 = vld [vmem:[%s5014_s1 + $0x160] sm:$0xff]   ;;  %v3107_v10 = vadd.f32 %v3106_v6, %v3105_v3  ;;  %v2952_v12 = vcombine.high %v2950_v5, %v2950_v5  ;;  %v3108_v13 = vsel %vm3104_vm0, %v2950_v5, 0.0  ;;  %v3862_v14 = vld [vmem:[%s5014_s1 + $0x168] sm:$0xff]  }
  0x12   :  { %3485 = vmatprep.subr.bf16.mxu1 %v3826_v17  ;;  %2352 = vmatprep.mubr.bf16.mxu1 %v203_v54  ;;  %v3859_v8 = vld [vmem:[%s5014_s1 + $0x1e0] sm:$0xff]   ;;  %v3863_v15 = vld [vmem:[%s5014_s1 + $0x1e8] sm:$0xff]   ;;  %v3869_v28 = vld [vmem:[%s5014_s1 + $0x1b0] sm:$0xff]  }
  0x13   :  { %v3860_v9 = vld [vmem:[%s5014_s1 + $0x120] sm:$0xff]   ;;  %v3864_v16 = vld [vmem:[%s5014_s1 + $0x128] sm:$0xff]   ;;  %v3109_v17 = vadd.f32 %v3108_v13, %v3107_v10  ;;  %v3871_v34 = vld [vmem:[%s5014_s1 + $0x1f8] sm:$0xff]  }
  0x14   :  { %3464 = vmatpush3.bf16.msra.mxu0 %v3827_v18  ;;  %v3861_v11 = vld [vmem:[%s5014_s1 + $0x1a0] sm:$0xff]   ;;  %v3865_v18 = vld [vmem:[%s5014_s1 + $0x1a8] sm:$0xff]   ;;  %v3873_v40 = vld [vmem:[%s5014_s1 + $0x1b8] sm:$0xff]  }
  0x15   :  { %3486 = vmatpush3.bf16.msra.mxu1 %v3828_v19  ;;  %3465 = vmatprep.subr.bf16.mxu0 %v3829_v20  ;;  %v3110_v19 = vsel %vm3104_vm0, %v2952_v12, 0.0  ;;  %v3866_v20 = vld [vmem:[%s5014_s1 + $0x170] sm:$0xff]   ;;  %v3879_v57 = vld [vmem:[%s5014_s1 + $0x248] sm:$0xff]   ;;  %v3888_v3 = vld [vmem:[%s5014_s1 + $0x2d8] sm:$0xff]  }
  0x16   :  { %3487 = vmatprep.subr.bf16.mxu1 %v3830_v21  ;;  %v3867_v21 = vld [vmem:[%s5014_s1 + $0x1f0] sm:$0xff]   ;;  %v3890_v5 = vld [vmem:[%s5014_s1 + $0x298] sm:$0xff]   ;;  %v3891_v6 = vld [vmem:[%s5014_s1 + $0x260] sm:$0xff]  }
  0x17   :  { %v3883_v62 = vld [vmem:[%s5014_s1 + $0x250] sm:$0xff]   ;;  %v3895_v10 = vld [vmem:[%s5014_s1 + $0x268] sm:$0xff]  }
  0x18   :  { %3466 = vmatpush3.bf16.msra.mxu0 %v3831_v22  ;;  %v17_v22 = vld [vmem:[%s5013_s0 + $0x8] sm:$0xff]  ;;  %v3884_v63 = vld [vmem:[%s5014_s1 + $0x2d0] sm:$0xff]  }
  0x19   :  { %3488 = vmatpush3.bf16.msra.mxu1 %v3832_v23  ;;  %3467 = vmatprep.subr.bf16.mxu0 %v3833_v24  ;;  %v3868_v23 = vld [vmem:[%s5014_s1 + $0x130] sm:$0xff]   ;;  %v56_v24 = vrot.slane %v17_v22, %v4226_v41  ;;  %v3897_v12 = vld [vmem:[%s5014_s1 + $0x228] sm:$0xff]  }
  0x1a   :  { %3489 = vmatprep.subr.bf16.mxu1 %v3834_v25  ;;  %v2921_v25 = vmul.f32 %v17_v22, %v17_v22  ;;  %v3898_v13 = vld [vmem:[%s5014_s1 + $0x2a8] sm:$0xff]  }
  0x1b   :  { %v204_v54 = vpack.c.bf16 %v56_v24, %v56_v24 }
  0x1c   :  { %3468 = vmatpush3.bf16.msra.mxu0 %v3835_v26  ;;  %v49_v26 = vcombine.high %v17_v22, %v17_v22  ;;  %v3903_v22 = vld [vmem:[%s5014_s1 + $0x278] sm:$0xff]  }
  0x1d   :  { %3490 = vmatpush3.bf16.msra.mxu1 %v3836_v27  ;;  %3469 = vmatprep.subr.bf16.mxu0 %v3837_v29  ;;  %v3111_v27 = vadd.f32 %v3110_v19, %v3109_v17  ;;  %v3870_v29 = vld [vmem:[%s5014_s1 + $0x178] sm:$0xff]   ;;  %v3901_v17 = vld [vmem:[%s5014_s1 + $0x230] sm:$0xff]  }
  0x1e   :  { %3491 = vmatprep.subr.bf16.mxu1 %v3838_v30  ;;  %v64_v30 = vcombine.high %v56_v24, %v56_v24  ;;  %v63_v33 = vrot.slane %v49_v26, %v4226_v41 }
  0x20   :  { %3470 = vmatpush3.bf16.msra.mxu0 %v3839_v31  ;;  %v2953_v31 = vcombine.high %v2921_v25, %v2921_v25  ;;  %v205_v36 = vpack.c.bf16 %v64_v30, %v64_v30  ;;  %v65_v43 = vcombine.high %v63_v33, %v63_v33 }
  0x21   :  { %3492 = vmatpush3.bf16.msra.mxu1 %v3840_v32  ;;  %3499 = vmatprep.subr.bf16.mxu0 %v3842_v35  ;;  %v2960_v32 = vrot.slane %v2921_v25, %v4226_v41  ;;  %v3872_v35 = vld [vmem:[%s5014_s1 + $0x138] sm:$0xff]  }
  0x22   :  { %3521 = vmatprep.subr.bf16.mxu1 %v3843_v38  ;;  %v2967_v37 = vrot.slane %v2953_v31, %v4226_v41  ;;  %v207_v50 = vpack.c.bf16 %v65_v43, %v65_v43  ;;  %v3909_v43 = vld [vmem:[%s5014_s1 + $0x3c0] sm:$0xff]  }
  0x23   :  { %2313 = vmatmul.mubr.bf16.vlgmr.msra.gmra.mrb[0].mxu0 %v200_v47  ;;  %v2968_v38 = vcombine.high %v2960_v32, %v2960_v32  ;;  %v3112_v39 = vsel %vm3104_vm0, %v2960_v32, 0.0  ;;  %v3875_v47 = vld [vmem:[%s5014_s1 + $0x240] sm:$0xff]  }
  0x24   :  { %2353 = vmatmul.mubr.bf16.vlgmr.msra.gmra.mrb[0].mxu1 %v202_v51  ;;  %3500 = vmatpush3.bf16.msra.mxu0 %v3844_v45  ;;  %v3113_v42 = vadd.f32 %v3112_v39, %v3111_v27  ;;  %v2969_v44 = vcombine.high %v2967_v37, %v2967_v37  ;;  %v3116_v46 = vsel %vm3104_vm0, %v2967_v37, 0.0  ;;  %v3877_v51 = vld [vmem:[%s5014_s1 + $0x200] sm:$0xff]   ;;  %v3904_v27 = vld [vmem:[%s5014_s1 + $0x2f8] sm:$0xff]  }
  0x25   :  { %3522 = vmatpush3.bf16.msra.mxu1 %v3845_v48  ;;  %3501 = vmatprep.subr.bf16.mxu0 %v3846_v52  ;;  %v3114_v45 = vsel %vm3104_vm0, %v2968_v38, 0.0  ;;  %v3876_v48 = vld [vmem:[%s5014_s1 + $0x2c0] sm:$0xff]  }
  0x26   :  { %3523 = vmatprep.subr.bf16.mxu1 %v3847_v53  ;;  %2392 = vmatprep.mubr.bf16.mxu0 %v205_v36  ;;  %v3115_v49 = vadd.f32 %v3114_v45, %v3113_v42  ;;  %v3118_v52 = vsel %vm3104_vm0, %v2969_v44, 0.0  ;;  %v3908_v42 = vld [vmem:[%s5014_s1 + $0x340] sm:$0xff]  }
  0x27   :  { %2432 = vmatprep.mubr.bf16.mxu1 %v207_v50  ;;  %v3912_v50 = vld [vmem:[%s5014_s1 + $0x348] sm:$0xff]  }
  0x28   :  { %3502 = vmatpush3.bf16.msra.mxu0 %v3848_v55  ;;  %v3117_v53 = vadd.f32 %v3116_v46, %v3115_v49  ;;  %v3878_v55 = vld [vmem:[%s5014_s1 + $0x280] sm:$0xff]  }
  0x29   :  { %3524 = vmatpush3.bf16.msra.mxu1 %v3849_v56  ;;  %3503 = vmatprep.subr.bf16.mxu0 %v3850_v58  ;;  %v206_v56 = vpack.c.bf16 %v63_v33, %v63_v33  ;;  %v3880_v58 = vld [vmem:[%s5014_s1 + $0x2c8] sm:$0xff]   ;;  %v3906_v33 = vld [vmem:[%s5014_s1 + $0x2b8] sm:$0xff]   ;;  %v3911_v49 = vld [vmem:[%s5014_s1 + $0x380] sm:$0xff]  }
  0x2a   :  { %3525 = vmatprep.subr.bf16.mxu1 %v3851_v59  ;;  %v4355_v59 = vadd.f32 %v3118_v52, %v3117_v53  ;;  %v3913_v52 = vld [vmem:[%s5014_s1 + $0x3c8] sm:$0xff]  }
  0x2b   :  { %v3914_v53 = vld [vmem:[%s5014_s1 + $0x308] sm:$0xff]  }
  0x2c   :  { %3504 = vmatpush3.bf16.msra.mxu0 %v3852_v60  ;;  %v3881_v60 = vld [vmem:[%s5014_s1 + $0x208] sm:$0xff]  }
  0x2d   :  { %3526 = vmatpush3.bf16.msra.mxu1 %v3853_v61  ;;  %3505 = vmatprep.subr.bf16.mxu0 %v3854_v0  ;;  %v3882_v61 = vld [vmem:[%s5014_s1 + $0x288] sm:$0xff]   ;;  %v3885_v0 = vld [vmem:[%s5014_s1 + $0x210] sm:$0xff]  }
  0x2e   :  { %3527 = vmatprep.subr.bf16.mxu1 %v3855_v1  ;;  %v3886_v1 = vld [vmem:[%s5014_s1 + $0x290] sm:$0xff]  }
  0x30   :  { %3506 = vmatpush3.bf16.msra.mxu0 %v3856_v2  ;;  %v3887_v2 = vld [vmem:[%s5014_s1 + $0x258] sm:$0xff]  }
  0x31   :  { %3528 = vmatpush3.bf16.msra.mxu1 %v3857_v4  ;;  %3507 = vmatprep.subr.bf16.mxu0 %v3858_v7  ;;  %v3889_v4 = vld [vmem:[%s5014_s1 + $0x218] sm:$0xff]   ;;  %v3892_v7 = vld [vmem:[%s5014_s1 + $0x2e0] sm:$0xff]  }
  0x32   :  { %3529 = vmatprep.subr.bf16.mxu1 %v3859_v8  ;;  %v3893_v8 = vld [vmem:[%s5014_s1 + $0x220] sm:$0xff]  }
  0x34   :  { %3508 = vmatpush3.bf16.msra.mxu0 %v3860_v9  ;;  %v3894_v9 = vld [vmem:[%s5014_s1 + $0x2a0] sm:$0xff]  }
  0x35   :  { %3530 = vmatpush3.bf16.msra.mxu1 %v3861_v11  ;;  %3509 = vmatprep.subr.bf16.mxu0 %v3862_v14  ;;  %v3896_v11 = vld [vmem:[%s5014_s1 + $0x2e8] sm:$0xff]   ;;  %v3899_v14 = vld [vmem:[%s5014_s1 + $0x270] sm:$0xff]  }
  0x36   :  { %3531 = vmatprep.subr.bf16.mxu1 %v3863_v15  ;;  %v3900_v15 = vld [vmem:[%s5014_s1 + $0x2f0] sm:$0xff]  }
  0x38   :  { %3510 = vmatpush3.bf16.msra.mxu0 %v3864_v16  ;;  %v18_v16 = vld [vmem:[%s5013_s0 + $0x10] sm:$0xff] }
  0x39   :  { %3532 = vmatpush3.bf16.msra.mxu1 %v3865_v18  ;;  %3511 = vmatprep.subr.bf16.mxu0 %v3866_v20  ;;  %v73_v18 = vrot.slane %v18_v16, %v4226_v41  ;;  %v2922_v19 = vmul.f32 %v18_v16, %v18_v16  ;;  %v66_v20 = vcombine.high %v18_v16, %v18_v16 }
  0x3a   :  { %3533 = vmatprep.subr.bf16.mxu1 %v3867_v21  ;;  %v3902_v21 = vld [vmem:[%s5014_s1 + $0x2b0] sm:$0xff]  }
  0x3b   :  { %v2970_v24 = vcombine.high %v2922_v19, %v2922_v19  ;;  %v2977_v25 = vrot.slane %v2922_v19, %v4226_v41  ;;  %v80_v26 = vrot.slane %v66_v20, %v4226_v41  ;;  %v208_v46 = vpack.c.bf16 %v73_v18, %v73_v18  ;;  %v3937_v19 = vld [vmem:[%s5014_s1 + $0x3f8] sm:$0xff]  }
  0x3c   :  { %3512 = vmatpush3.bf16.msra.mxu0 %v3868_v23  ;;  %v81_v23 = vcombine.high %v73_v18, %v73_v18 }
  0x3d   :  { %3534 = vmatpush3.bf16.msra.mxu1 %v3869_v28  ;;  %3513 = vmatprep.subr.bf16.mxu0 %v3870_v29  ;;  %v3905_v28 = vld [vmem:[%s5014_s1 + $0x238] sm:$0xff]   ;;  %v2984_v30 = vrot.slane %v2970_v24, %v4226_v41  ;;  %v2985_v31 = vcombine.high %v2977_v25, %v2977_v25  ;;  %v3120_v32 = vsel %vm3104_vm0, %v2977_v25, 0.0 }
  0x3e   :  { %3535 = vmatprep.subr.bf16.mxu1 %v3871_v34  ;;  %v209_v29 = vpack.c.bf16 %v81_v23, %v81_v23  ;;  %v3121_v34 = vadd.f32 %v3120_v32, %v4355_v59  ;;  %v3920_v59 = vld [vmem:[%s5014_s1 + $0x358] sm:$0xff]   ;;  %v3941_v32 = vld [vmem:[%s5014_s1 + $0x440] sm:$0xff]  }
  0x3f   :  { %v2986_v36 = vcombine.high %v2984_v30, %v2984_v30  ;;  %v3122_v37 = vsel %vm3104_vm0, %v2985_v31, 0.0  ;;  %v3124_v38 = vsel %vm3104_vm0, %v2984_v30, 0.0 }
  0x40   :  { %3514 = vmatpush3.bf16.msra.mxu0 %v3872_v35  ;;  %v82_v35 = vcombine.high %v80_v26, %v80_v26  ;;  %v3123_v39 = vadd.f32 %v3122_v37, %v3121_v34 }
  0x41   :  { %3536 = vmatpush3.bf16.msra.mxu1 %v3873_v40  ;;  %3543 = vmatprep.subr.bf16.mxu0 %v3875_v47  ;;  %v3126_v44 = vsel %vm3104_vm0, %v2986_v36, 0.0  ;;  %v3910_v47 = vld [vmem:[%s5014_s1 + $0x300] sm:$0xff]  }
  0x42   :  { %3565 = vmatprep.subr.bf16.mxu1 %v3876_v48  ;;  %v211_v40 = vpack.c.bf16 %v82_v35, %v82_v35  ;;  %v3125_v45 = vadd.f32 %v3124_v38, %v3123_v39  ;;  %v210_v48 = vpack.c.bf16 %v80_v26, %v80_v26  ;;  %v3939_v26 = vld [vmem:[%s5014_s1 + $0x3b8] sm:$0xff]   ;;  %v3943_v36 = vld [vmem:[%s5014_s1 + $0x400] sm:$0xff]  }
  0x43   :  { %2393 = vmatmul.mubr.bf16.vlgmr.msra.gmra.mrb[4].mxu0 %v204_v54  ;;  %v3915_v54 = vld [vmem:[%s5014_s1 + $0x388] sm:$0xff]   ;;  %v3944_v38 = vld [vmem:[%s5014_s1 + $0x480] sm:$0xff]  }
  0x44   :  { %2433 = vmatmul.mubr.bf16.vlgmr.msra.gmra.mrb[4].mxu1 %v206_v56  ;;  %3544 = vmatpush3.bf16.msra.mxu0 %v3877_v51  ;;  %v4462_v51 = vadd.f32 %v3126_v44, %v3125_v45  ;;  %v3917_v56 = vld [vmem:[%s5014_s1 + $0x3d0] sm:$0xff]   ;;  %v3946_v44 = vld [vmem:[%s5014_s1 + $0x4c8] sm:$0xff]  }
  0x45   :  { %3566 = vmatpush3.bf16.msra.mxu1 %v3878_v55  ;;  %3545 = vmatprep.subr.bf16.mxu0 %v3879_v57  ;;  %v3916_v55 = vld [vmem:[%s5014_s1 + $0x350] sm:$0xff]   ;;  %v3947_v45 = vld [vmem:[%s5014_s1 + $0x408] sm:$0xff]  }
  0x46   :  { %3567 = vmatprep.subr.bf16.mxu1 %v3880_v58  ;;  %2472 = vmatprep.mubr.bf16.mxu0 %v209_v29  ;;  %v3918_v57 = vld [vmem:[%s5014_s1 + $0x310] sm:$0xff]  }
  0x47   :  { %2512 = vmatprep.mubr.bf16.mxu1 %v211_v40  ;;  %v3919_v58 = vld [vmem:[%s5014_s1 + $0x390] sm:$0xff]  }
  0x48   :  { %3546 = vmatpush3.bf16.msra.mxu0 %v3881_v60  ;;  %v3921_v60 = vld [vmem:[%s5014_s1 + $0x3d8] sm:$0xff]  }
  0x49   :  { %3568 = vmatpush3.bf16.msra.mxu1 %v3882_v61  ;;  %3547 = vmatprep.subr.bf16.mxu0 %v3883_v62  ;;  %v3922_v61 = vld [vmem:[%s5014_s1 + $0x318] sm:$0xff]  }
  0x4a   :  { %3569 = vmatprep.subr.bf16.mxu1 %v3884_v63  ;;  %v3923_v62 = vld [vmem:[%s5014_s1 + $0x398] sm:$0xff]   ;;  %v3924_v63 = vld [vmem:[%s5014_s1 + $0x360] sm:$0xff]  }
  0x4c   :  { %3548 = vmatpush3.bf16.msra.mxu0 %v3885_v0  ;;  %v3925_v0 = vld [vmem:[%s5014_s1 + $0x3e0] sm:$0xff]  }
  0x4d   :  { %3570 = vmatpush3.bf16.msra.mxu1 %v3886_v1  ;;  %3549 = vmatprep.subr.bf16.mxu0 %v3887_v2  ;;  %v3926_v1 = vld [vmem:[%s5014_s1 + $0x320] sm:$0xff]  }
  0x4e   :  { %3571 = vmatprep.subr.bf16.mxu1 %v3888_v3  ;;  %v3927_v2 = vld [vmem:[%s5014_s1 + $0x3a0] sm:$0xff]   ;;  %v3928_v3 = vld [vmem:[%s5014_s1 + $0x368] sm:$0xff]  }
  0x50   :  { %3550 = vmatpush3.bf16.msra.mxu0 %v3889_v4  ;;  %v3929_v4 = vld [vmem:[%s5014_s1 + $0x3e8] sm:$0xff]  }
  0x51   :  { %3572 = vmatpush3.bf16.msra.mxu1 %v3890_v5  ;;  %3551 = vmatprep.subr.bf16.mxu0 %v3891_v6  ;;  %v3930_v5 = vld [vmem:[%s5014_s1 + $0x328] sm:$0xff]  }
  0x52   :  { %3573 = vmatprep.subr.bf16.mxu1 %v3892_v7  ;;  %v3931_v6 = vld [vmem:[%s5014_s1 + $0x3a8] sm:$0xff]   ;;  %v3932_v7 = vld [vmem:[%s5014_s1 + $0x370] sm:$0xff]  }
  0x54   :  { %3552 = vmatpush3.bf16.msra.mxu0 %v3893_v8  ;;  %v3933_v8 = vld [vmem:[%s5014_s1 + $0x3f0] sm:$0xff]  }
  0x55   :  { %3574 = vmatpush3.bf16.msra.mxu1 %v3894_v9  ;;  %3553 = vmatprep.subr.bf16.mxu0 %v3895_v10  ;;  %v19_v9 = vld [vmem:[%s5013_s0 + $0x18] sm:$0xff]  ;;  %v3934_v10 = vld [vmem:[%s5014_s1 + $0x330] sm:$0xff]  }
  0x56   :  { %3575 = vmatprep.subr.bf16.mxu1 %v3896_v11  ;;  %v90_v11 = vrot.slane %v19_v9, %v4226_v41 }
  0x58   :  { %3554 = vmatpush3.bf16.msra.mxu0 %v3897_v12  ;;  %v2923_v12 = vmul.f32 %v19_v9, %v19_v9  ;;  %v98_v16 = vcombine.high %v90_v11, %v90_v11  ;;  %v212_v37 = vpack.c.bf16 %v90_v11, %v90_v11 }
  0x59   :  { %3576 = vmatpush3.bf16.msra.mxu1 %v3898_v13  ;;  %3555 = vmatprep.subr.bf16.mxu0 %v3899_v14  ;;  %v83_v13 = vcombine.high %v19_v9, %v19_v9  ;;  %v3935_v14 = vld [vmem:[%s5014_s1 + $0x3b0] sm:$0xff]   ;;  %v3970_v9 = vld [vmem:[%s5014_s1 + $0x4f8] sm:$0xff]  }
  0x5a   :  { %3577 = vmatprep.subr.bf16.mxu1 %v3900_v15  ;;  %v3936_v15 = vld [vmem:[%s5014_s1 + $0x378] sm:$0xff]   ;;  %v2994_v18 = vrot.slane %v2923_v12, %v4226_v41 }
  0x5b   :  { %v97_v20 = vrot.slane %v83_v13, %v4226_v41  ;;  %v3971_v13 = vld [vmem:[%s5014_s1 + $0x438] sm:$0xff]  }
  0x5c   :  { %3556 = vmatpush3.bf16.msra.mxu0 %v3901_v17  ;;  %v2987_v17 = vcombine.high %v2923_v12, %v2923_v12  ;;  %v3002_v24 = vcombine.high %v2994_v18, %v2994_v18  ;;  %v3128_v25 = vsel %vm3104_vm0, %v2994_v18, 0.0 }
  0x5d   :  { %3578 = vmatpush3.bf16.msra.mxu1 %v3902_v21  ;;  %3557 = vmatprep.subr.bf16.mxu0 %v3903_v22  ;;  %v3938_v21 = vld [vmem:[%s5014_s1 + $0x338] sm:$0xff]   ;;  %v213_v22 = vpack.c.bf16 %v98_v16, %v98_v16 }
  0x5e   :  { %3579 = vmatprep.subr.bf16.mxu1 %v3904_v27  ;;  %v3001_v23 = vrot.slane %v2987_v17, %v4226_v41  ;;  %v3129_v27 = vadd.f32 %v3128_v25, %v4462_v51  ;;  %v3130_v30 = vsel %vm3104_vm0, %v3002_v24, 0.0  ;;  %v3952_v51 = vld [vmem:[%s5014_s1 + $0x490] sm:$0xff]  }
  0x60   :  { %3558 = vmatpush3.bf16.msra.mxu0 %v3905_v28  ;;  %v99_v28 = vcombine.high %v97_v20, %v97_v20  ;;  %v3003_v29 = vcombine.high %v3001_v23, %v3001_v23  ;;  %v3132_v31 = vsel %vm3104_vm0, %v3001_v23, 0.0  ;;  %v3131_v34 = vadd.f32 %v3130_v30, %v3129_v27  ;;  %v3976_v30 = vld [vmem:[%s5014_s1 + $0x500] sm:$0xff]  }
  0x61   :  { %3580 = vmatpush3.bf16.msra.mxu1 %v3906_v33  ;;  %3587 = vmatprep.subr.bf16.mxu0 %v3908_v42  ;;  %v3942_v33 = vld [vmem:[%s5014_s1 + $0x4c0] sm:$0xff]   ;;  %v214_v42 = vpack.c.bf16 %v97_v20, %v97_v20 }
  0x62   :  { %3609 = vmatprep.subr.bf16.mxu1 %v3909_v43  ;;  %v215_v35 = vpack.c.bf16 %v99_v28, %v99_v28  ;;  %v3134_v39 = vsel %vm3104_vm0, %v3003_v29, 0.0  ;;  %v3133_v40 = vadd.f32 %v3132_v31, %v3131_v34  ;;  %v3945_v43 = vld [vmem:[%s5014_s1 + $0x448] sm:$0xff]   ;;  %v3975_v28 = vld [vmem:[%s5014_s1 + $0x5c0] sm:$0xff]  }
  0x63   :  { %2473 = vmatmul.mubr.bf16.vlgmr.msra.gmra.mrb[8].mxu0 %v208_v46  ;;  %v3977_v34 = vld [vmem:[%s5014_s1 + $0x580] sm:$0xff]  }
  0x64   :  { %2513 = vmatmul.mubr.bf16.vlgmr.msra.gmra.mrb[8].mxu1 %v210_v48  ;;  %3588 = vmatpush3.bf16.msra.mxu0 %v3910_v47  ;;  %v4578_v46 = vadd.f32 %v3134_v39, %v3133_v40  ;;  %v3948_v47 = vld [vmem:[%s5014_s1 + $0x488] sm:$0xff]   ;;  %v3949_v48 = vld [vmem:[%s5014_s1 + $0x450] sm:$0xff]  }
  0x65   :  { %3610 = vmatpush3.bf16.msra.mxu1 %v3911_v49  ;;  %3589 = vmatprep.subr.bf16.mxu0 %v3912_v50  ;;  %v3950_v49 = vld [vmem:[%s5014_s1 + $0x4d0] sm:$0xff]   ;;  %v3981_v39 = vld [vmem:[%s5014_s1 + $0x588] sm:$0xff]  }
  0x66   :  { %3611 = vmatprep.subr.bf16.mxu1 %v3913_v52  ;;  %2552 = vmatprep.mubr.bf16.mxu0 %v213_v22  ;;  %v3951_v50 = vld [vmem:[%s5014_s1 + $0x410] sm:$0xff]   ;;  %v3953_v52 = vld [vmem:[%s5014_s1 + $0x458] sm:$0xff]   ;;  %v3974_v22 = vld [vmem:[%s5014_s1 + $0x540] sm:$0xff]  }
  0x67   :  { %2592 = vmatprep.mubr.bf16.mxu1 %v215_v35  ;;  %v3978_v35 = vld [vmem:[%s5014_s1 + $0x548] sm:$0xff]   ;;  %v3982_v40 = vld [vmem:[%s5014_s1 + $0x550] sm:$0xff]  }
  0x68   :  { %3590 = vmatpush3.bf16.msra.mxu0 %v3914_v53  ;;  %v3954_v53 = vld [vmem:[%s5014_s1 + $0x4d8] sm:$0xff]  }
  0x69   :  { %3612 = vmatpush3.bf16.msra.mxu1 %v3915_v54  ;;  %3591 = vmatprep.subr.bf16.mxu0 %v3916_v55  ;;  %v3955_v54 = vld [vmem:[%s5014_s1 + $0x418] sm:$0xff]  }
  0x6a   :  { %3613 = vmatprep.subr.bf16.mxu1 %v3917_v56  ;;  %v3956_v55 = vld [vmem:[%s5014_s1 + $0x498] sm:$0xff]   ;;  %v3957_v56 = vld [vmem:[%s5014_s1 + $0x460] sm:$0xff]  }
  0x6c   :  { %3592 = vmatpush3.bf16.msra.mxu0 %v3918_v57  ;;  %v3958_v57 = vld [vmem:[%s5014_s1 + $0x4e0] sm:$0xff]  }
  0x6d   :  { %3614 = vmatpush3.bf16.msra.mxu1 %v3919_v58  ;;  %3593 = vmatprep.subr.bf16.mxu0 %v3920_v59  ;;  %v3959_v58 = vld [vmem:[%s5014_s1 + $0x420] sm:$0xff]  }
  0x6e   :  { %3615 = vmatprep.subr.bf16.mxu1 %v3921_v60  ;;  %v3960_v59 = vld [vmem:[%s5014_s1 + $0x4a0] sm:$0xff]   ;;  %v3961_v60 = vld [vmem:[%s5014_s1 + $0x468] sm:$0xff]  }
  0x70   :  { %3594 = vmatpush3.bf16.msra.mxu0 %v3922_v61  ;;  %v3962_v61 = vld [vmem:[%s5014_s1 + $0x4e8] sm:$0xff]  }
  0x71   :  { %3616 = vmatpush3.bf16.msra.mxu1 %v3923_v62  ;;  %3595 = vmatprep.subr.bf16.mxu0 %v3924_v63  ;;  %v3963_v62 = vld [vmem:[%s5014_s1 + $0x428] sm:$0xff]  }
  0x72   :  { %3617 = vmatprep.subr.bf16.mxu1 %v3925_v0  ;;  %v3964_v63 = vld [vmem:[%s5014_s1 + $0x4a8] sm:$0xff]   ;;  %v3965_v0 = vld [vmem:[%s5014_s1 + $0x470] sm:$0xff]  }
  0x74   :  { %3596 = vmatpush3.bf16.msra.mxu0 %v3926_v1  ;;  %v3966_v1 = vld [vmem:[%s5014_s1 + $0x4f0] sm:$0xff]  }
  0x75   :  { %3618 = vmatpush3.bf16.msra.mxu1 %v3927_v2  ;;  %3597 = vmatprep.subr.bf16.mxu0 %v3928_v3  ;;  %v3967_v2 = vld [vmem:[%s5014_s1 + $0x430] sm:$0xff]   ;;  %v20_v3 = vld [vmem:[%s5013_s0 + $0x20] sm:$0xff] }
  0x76   :  { %3619 = vmatprep.subr.bf16.mxu1 %v3929_v4  ;;  %v3968_v4 = vld [vmem:[%s5014_s1 + $0x4b0] sm:$0xff]  }
  0x78   :  { %3598 = vmatpush3.bf16.msra.mxu0 %v3930_v5  ;;  %v107_v5 = vrot.slane %v20_v3, %v4226_v41 }
  0x79   :  { %3620 = vmatpush3.bf16.msra.mxu1 %v3931_v6  ;;  %3599 = vmatprep.subr.bf16.mxu0 %v3932_v7  ;;  %v2924_v6 = vmul.f32 %v20_v3, %v20_v3  ;;  %v100_v7 = vcombine.high %v20_v3, %v20_v3 }
  0x7a   :  { %3621 = vmatprep.subr.bf16.mxu1 %v3933_v8  ;;  %v3969_v8 = vld [vmem:[%s5014_s1 + $0x478] sm:$0xff]   ;;  %v216_v29 = vpack.c.bf16 %v107_v5, %v107_v5 }
  0x7b   :  { %v3004_v11 = vcombine.high %v2924_v6, %v2924_v6  ;;  %v3011_v12 = vrot.slane %v2924_v6, %v4226_v41 }
  0x7c   :  { %3600 = vmatpush3.bf16.msra.mxu0 %v3934_v10  ;;  %v115_v10 = vcombine.high %v107_v5, %v107_v5  ;;  %v4005_v5 = vld [vmem:[%s5014_s1 + $0x5b8] sm:$0xff]  }
  0x7d   :  { %3622 = vmatpush3.bf16.msra.mxu1 %v3935_v14  ;;  %3601 = vmatprep.subr.bf16.mxu0 %v3936_v15  ;;  %v114_v14 = vrot.slane %v100_v7, %v4226_v41  ;;  %v3972_v15 = vld [vmem:[%s5014_s1 + $0x4b8] sm:$0xff]   ;;  %v3018_v17 = vrot.slane %v3004_v11, %v4226_v41  ;;  %v3019_v18 = vcombine.high %v3011_v12, %v3011_v12 }
  0x7e   :  { %3623 = vmatprep.subr.bf16.mxu1 %v3937_v19  ;;  %v217_v16 = vpack.c.bf16 %v115_v10, %v115_v10  ;;  %v3136_v19 = vsel %vm3104_vm0, %v3011_v12, 0.0  ;;  %v4009_v10 = vld [vmem:[%s5014_s1 + $0x600] sm:$0xff]  }
  0x7f   :  { %v3137_v20 = vadd.f32 %v3136_v19, %v4578_v46  ;;  %v3020_v23 = vcombine.high %v3018_v17, %v3018_v17  ;;  %v3138_v24 = vsel %vm3104_vm0, %v3019_v18, 0.0  ;;  %v3140_v25 = vsel %vm3104_vm0, %v3018_v17, 0.0  ;;  %v3987_v46 = vld [vmem:[%s5014_s1 + $0x5d8] sm:$0xff]   ;;  %v4013_v17 = vld [vmem:[%s5014_s1 + $0x608] sm:$0xff]   ;;  %v4015_v19 = vld [vmem:[%s5014_s1 + $0x650] sm:$0xff]  }
  0x80   :  { %3602 = vmatpush3.bf16.msra.mxu0 %v3938_v21  ;;  %v116_v21 = vcombine.high %v114_v14, %v114_v14  ;;  %v4014_v18 = vld [vmem:[%s5014_s1 + $0x688] sm:$0xff]  }
  0x81   :  { %3624 = vmatpush3.bf16.msra.mxu1 %v3939_v26  ;;  %3631 = vmatprep.subr.bf16.mxu0 %v3941_v32  ;;  %v3139_v26 = vadd.f32 %v3138_v24, %v3137_v20  ;;  %v3142_v31 = vsel %vm3104_vm0, %v3020_v23, 0.0  ;;  %v4016_v20 = vld [vmem:[%s5014_s1 + $0x6d0] sm:$0xff]   ;;  %v4019_v23 = vld [vmem:[%s5014_s1 + $0x658] sm:$0xff]  }
  0x82   :  { %3653 = vmatprep.subr.bf16.mxu1 %v3942_v33  ;;  %v219_v27 = vpack.c.bf16 %v116_v21, %v116_v21  ;;  %v218_v33 = vpack.c.bf16 %v114_v14, %v114_v14  ;;  %v4010_v14 = vld [vmem:[%s5014_s1 + $0x680] sm:$0xff]   ;;  %v4017_v21 = vld [vmem:[%s5014_s1 + $0x610] sm:$0xff]   ;;  %v4020_v24 = vld [vmem:[%s5014_s1 + $0x6d8] sm:$0xff]  }
  0x83   :  { %2553 = vmatmul.mubr.bf16.vlgmr.msra.gmra.mrb[12].mxu0 %v212_v37  ;;  %v3141_v32 = vadd.f32 %v3140_v25, %v3139_v26  ;;  %v4021_v25 = vld [vmem:[%s5014_s1 + $0x618] sm:$0xff]  }
  0x84   :  { %2593 = vmatmul.mubr.bf16.vlgmr.msra.gmra.mrb[12].mxu1 %v214_v42  ;;  %3632 = vmatpush3.bf16.msra.mxu0 %v3943_v36  ;;  %v3979_v36 = vld [vmem:[%s5014_s1 + $0x5c8] sm:$0xff]   ;;  %v3983_v42 = vld [vmem:[%s5014_s1 + $0x5d0] sm:$0xff]   ;;  %v4022_v26 = vld [vmem:[%s5014_s1 + $0x698] sm:$0xff]  }
  0x85   :  { %3654 = vmatpush3.bf16.msra.mxu1 %v3944_v38  ;;  %3633 = vmatprep.subr.bf16.mxu0 %v3945_v43  ;;  %v4685_v37 = vadd.f32 %v3142_v31, %v3141_v32  ;;  %v3980_v38 = vld [vmem:[%s5014_s1 + $0x508] sm:$0xff]   ;;  %v3984_v43 = vld [vmem:[%s5014_s1 + $0x510] sm:$0xff]  }
  0x86   :  { %3655 = vmatprep.subr.bf16.mxu1 %v3946_v44  ;;  %2632 = vmatprep.mubr.bf16.mxu0 %v217_v16  ;;  %v3985_v44 = vld [vmem:[%s5014_s1 + $0x590] sm:$0xff]   ;;  %v4012_v16 = vld [vmem:[%s5014_s1 + $0x6c8] sm:$0xff]  }
  0x87   :  { %2672 = vmatprep.mubr.bf16.mxu1 %v219_v27  ;;  %v4023_v27 = vld [vmem:[%s5014_s1 + $0x660] sm:$0xff]   ;;  %v4027_v31 = vld [vmem:[%s5014_s1 + $0x668] sm:$0xff]  }
  0x88   :  { %3634 = vmatpush3.bf16.msra.mxu0 %v3947_v45  ;;  %v3986_v45 = vld [vmem:[%s5014_s1 + $0x558] sm:$0xff]   ;;  %v4028_v32 = vld [vmem:[%s5014_s1 + $0x6e8] sm:$0xff]  }
  0x89   :  { %3656 = vmatpush3.bf16.msra.mxu1 %v3948_v47  ;;  %3635 = vmatprep.subr.bf16.mxu0 %v3949_v48  ;;  %v3988_v47 = vld [vmem:[%s5014_s1 + $0x518] sm:$0xff]  }
  0x8a   :  { %3657 = vmatprep.subr.bf16.mxu1 %v3950_v49  ;;  %v3989_v48 = vld [vmem:[%s5014_s1 + $0x598] sm:$0xff]   ;;  %v3990_v49 = vld [vmem:[%s5014_s1 + $0x560] sm:$0xff]  }
  0x8c   :  { %3636 = vmatpush3.bf16.msra.mxu0 %v3951_v50  ;;  %v3991_v50 = vld [vmem:[%s5014_s1 + $0x5e0] sm:$0xff]  }
  0x8d   :  { %3658 = vmatpush3.bf16.msra.mxu1 %v3952_v51  ;;  %3637 = vmatprep.subr.bf16.mxu0 %v3953_v52  ;;  %v3992_v51 = vld [vmem:[%s5014_s1 + $0x520] sm:$0xff]  }
  0x8e   :  { %3659 = vmatprep.subr.bf16.mxu1 %v3954_v53  ;;  %v3993_v52 = vld [vmem:[%s5014_s1 + $0x5a0] sm:$0xff]   ;;  %v3994_v53 = vld [vmem:[%s5014_s1 + $0x568] sm:$0xff]  }
  0x90   :  { %3638 = vmatpush3.bf16.msra.mxu0 %v3955_v54  ;;  %v3995_v54 = vld [vmem:[%s5014_s1 + $0x5e8] sm:$0xff]  }
  0x91   :  { %3660 = vmatpush3.bf16.msra.mxu1 %v3956_v55  ;;  %3639 = vmatprep.subr.bf16.mxu0 %v3957_v56  ;;  %v3996_v55 = vld [vmem:[%s5014_s1 + $0x528] sm:$0xff]  }
  0x92   :  { %3661 = vmatprep.subr.bf16.mxu1 %v3958_v57  ;;  %v3997_v56 = vld [vmem:[%s5014_s1 + $0x5a8] sm:$0xff]   ;;  %v3998_v57 = vld [vmem:[%s5014_s1 + $0x570] sm:$0xff]  }
  0x94   :  { %3640 = vmatpush3.bf16.msra.mxu0 %v3959_v58  ;;  %v3999_v58 = vld [vmem:[%s5014_s1 + $0x5f0] sm:$0xff]  }
  0x95   :  { %3662 = vmatpush3.bf16.msra.mxu1 %v3960_v59  ;;  %3641 = vmatprep.subr.bf16.mxu0 %v3961_v60  ;;  %v4000_v59 = vld [vmem:[%s5014_s1 + $0x530] sm:$0xff]   ;;  %v4753_v60 = vld [vmem:[%s5013_s0 + $0x28] sm:$0xff] }
  0x96   :  { %3663 = vmatprep.subr.bf16.mxu1 %v3962_v61  ;;  %v4001_v61 = vld [vmem:[%s5014_s1 + $0x5b0] sm:$0xff]  }
  0x98   :  { %3642 = vmatpush3.bf16.msra.mxu0 %v3963_v62  ;;  %v124_v62 = vrot.slane %v4753_v60, %v4226_v41 }
  0x99   :  { %3664 = vmatpush3.bf16.msra.mxu1 %v3964_v63  ;;  %3643 = vmatprep.subr.bf16.mxu0 %v3965_v0  ;;  %v117_v63 = vcombine.high %v4753_v60, %v4753_v60  ;;  %v4002_v0 = vld [vmem:[%s5014_s1 + $0x578] sm:$0xff]  }
  0x9a   :  { %3665 = vmatprep.subr.bf16.mxu1 %v3966_v1  ;;  %v4003_v1 = vld [vmem:[%s5014_s1 + $0x5f8] sm:$0xff]   ;;  %v220_v12 = vpack.c.bf16 %v124_v62, %v124_v62 }
  0x9b   :  { %v131_v3 = vrot.slane %v117_v63, %v4226_v41 }
  0x9c   :  { %3644 = vmatpush3.bf16.msra.mxu0 %v3967_v2  ;;  %v132_v2 = vcombine.high %v124_v62, %v124_v62  ;;  %v4042_v62 = vld [vmem:[%s5014_s1 + $0x700] sm:$0xff]  }
  0x9d   :  { %3666 = vmatpush3.bf16.msra.mxu1 %v3968_v4  ;;  %3645 = vmatprep.subr.bf16.mxu0 %v3969_v8  ;;  %v4004_v4 = vld [vmem:[%s5014_s1 + $0x538] sm:$0xff]   ;;  %v133_v7 = vcombine.high %v131_v3, %v131_v3  ;;  %v4007_v8 = vld [vmem:[%s5014_s1 + $0x640] sm:$0xff]  }
  0x9e   :  { %3667 = vmatprep.subr.bf16.mxu1 %v3970_v9  ;;  %v221_v6 = vpack.c.bf16 %v132_v2, %v132_v2  ;;  %v4008_v9 = vld [vmem:[%s5014_s1 + $0x6c0] sm:$0xff]  }
  0x9f   :  { %v223_v11 = vpack.c.bf16 %v133_v7, %v133_v7  ;;  %v4043_v2 = vld [vmem:[%s5014_s1 + $0x780] sm:$0xff]  }
  0xa0   :  { %3646 = vmatpush3.bf16.msra.mxu0 %v3971_v13  ;;  %v222_v13 = vpack.c.bf16 %v131_v3, %v131_v3  ;;  %v4045_v3 = vld [vmem:[%s5014_s1 + $0x7c8] sm:$0xff]  }
  0xa1   :  { %3668 = vmatpush3.bf16.msra.mxu1 %v3972_v15  ;;  %3675 = vmatprep.subr.bf16.mxu0 %v3974_v22  ;;  %v4011_v15 = vld [vmem:[%s5014_s1 + $0x648] sm:$0xff]   ;;  %v4018_v22 = vld [vmem:[%s5014_s1 + $0x690] sm:$0xff]  }
  0xa2   :  { %3697 = vmatprep.subr.bf16.mxu1 %v3975_v28  ;;  %v4024_v28 = vld [vmem:[%s5014_s1 + $0x6e0] sm:$0xff]  }
  0xa3   :  { %2633 = vmatmul.mubr.bf16.vlgmr.msra.gmra.mrb[16].mxu0 %v216_v29  ;;  %v4025_v29 = vld [vmem:[%s5014_s1 + $0x620] sm:$0xff]  }
  0xa4   :  { %2673 = vmatmul.mubr.bf16.vlgmr.msra.gmra.mrb[16].mxu1 %v218_v33  ;;  %3676 = vmatpush3.bf16.msra.mxu0 %v3976_v30  ;;  %v4026_v30 = vld [vmem:[%s5014_s1 + $0x6a0] sm:$0xff]   ;;  %v4029_v33 = vld [vmem:[%s5014_s1 + $0x628] sm:$0xff]  }
  0xa5   :  { %3698 = vmatpush3.bf16.msra.mxu1 %v3977_v34  ;;  %3677 = vmatprep.subr.bf16.mxu0 %v3978_v35  ;;  %v2925_v34 = vmul.f32 %v4753_v60, %v4753_v60  ;;  %v4030_v35 = vld [vmem:[%s5014_s1 + $0x6a8] sm:$0xff]  }
  0xa6   :  { %3699 = vmatprep.subr.bf16.mxu1 %v3979_v36  ;;  %2712 = vmatprep.mubr.bf16.mxu0 %v221_v6  ;;  %v4031_v36 = vld [vmem:[%s5014_s1 + $0x670] sm:$0xff]  }
  0xa7   :  { %2752 = vmatprep.mubr.bf16.mxu1 %v223_v11  ;;  %v4049_v11 = vld [vmem:[%s5014_s1 + $0x7d0] sm:$0xff]  }
  0xa8   :  { %3678 = vmatpush3.bf16.msra.mxu0 %v3980_v38  ;;  %v4032_v38 = vld [vmem:[%s5014_s1 + $0x6f0] sm:$0xff]  }
  0xa9   :  { %3700 = vmatpush3.bf16.msra.mxu1 %v3981_v39  ;;  %3679 = vmatprep.subr.bf16.mxu0 %v3982_v40  ;;  %v4033_v39 = vld [vmem:[%s5014_s1 + $0x630] sm:$0xff]  }
  0xaa   :  { %3701 = vmatprep.subr.bf16.mxu1 %v3983_v42  ;;  %v22_v40 = vld [vmem:[%s5013_s0 + $0x30] sm:$0xff]  ;;  %v3028_v42 = vrot.slane %v2925_v34, %v4226_v41 }
  0xac   :  { %3680 = vmatpush3.bf16.msra.mxu0 %v3984_v43  ;;  %v4034_v43 = vld [vmem:[%s5014_s1 + $0x6b0] sm:$0xff]  }
  0xad   :  { %3702 = vmatpush3.bf16.msra.mxu1 %v3985_v44  ;;  %3681 = vmatprep.subr.bf16.mxu0 %v3986_v45  ;;  %v141_v44 = vrot.slane %v22_v40, %v4226_v41  ;;  %v134_v45 = vcombine.high %v22_v40, %v22_v40 }
  0xae   :  { %3703 = vmatprep.subr.bf16.mxu1 %v3987_v46  ;;  %v4035_v46 = vld [vmem:[%s5014_s1 + $0x678] sm:$0xff]  }
  0xb0   :  { %3682 = vmatpush3.bf16.msra.mxu0 %v3988_v47  ;;  %v4036_v47 = vld [vmem:[%s5014_s1 + $0x6f8] sm:$0xff]  }
  0xb1   :  { %3704 = vmatpush3.bf16.msra.mxu1 %v3989_v48  ;;  %3683 = vmatprep.subr.bf16.mxu0 %v3990_v49  ;;  %v149_v48 = vcombine.high %v141_v44, %v141_v44  ;;  %v148_v49 = vrot.slane %v134_v45, %v4226_v41 }
  0xb2   :  { %3705 = vmatprep.subr.bf16.mxu1 %v3991_v50  ;;  %v3021_v50 = vcombine.high %v2925_v34, %v2925_v34  ;;  %v4061_v34 = vld [vmem:[%s5014_s1 + $0x7e8] sm:$0xff]  }
  0xb4   :  { %3684 = vmatpush3.bf16.msra.mxu0 %v3992_v51  ;;  %v4037_v51 = vld [vmem:[%s5014_s1 + $0x638] sm:$0xff]   ;;  %v3035_v63 = vrot.slane %v3021_v50, %v4226_v41 }
  0xb5   :  { %3706 = vmatpush3.bf16.msra.mxu1 %v3993_v52  ;;  %3685 = vmatprep.subr.bf16.mxu0 %v3994_v53  ;;  %v3036_v52 = vcombine.high %v3028_v42, %v3028_v42  ;;  %v3144_v53 = vsel %vm3104_vm0, %v3028_v42, 0.0 }
  0xb6   :  { %3707 = vmatprep.subr.bf16.mxu1 %v3995_v54  ;;  %v4038_v54 = vld [vmem:[%s5014_s1 + $0x6b8] sm:$0xff]   ;;  %v3145_v60 = vadd.f32 %v3144_v53, %v4685_v37  ;;  %v4044_v37 = vld [vmem:[%s5014_s1 + $0x748] sm:$0xff]   ;;  %v3037_v6 = vcombine.high %v3035_v63, %v3035_v63  ;;  %v3148_v7 = vsel %vm3104_vm0, %v3035_v63, 0.0 }
  0xb8   :  { %3686 = vmatpush3.bf16.msra.mxu0 %v3996_v55  ;;  %v225_v55 = vpack.c.bf16 %v149_v48, %v149_v48 }
  0xb9   :  { %3708 = vmatpush3.bf16.msra.mxu1 %v3997_v56  ;;  %3687 = vmatprep.subr.bf16.mxu0 %v3998_v57  ;;  %v150_v56 = vcombine.high %v148_v49, %v148_v49  ;;  %v4040_v57 = vld [vmem:[%s5014_s1 + $0x740] sm:$0xff]  }
  0xba   :  { %3709 = vmatprep.subr.bf16.mxu1 %v3999_v58 }
  0xbb   :  { %v227_v58 = vpack.c.bf16 %v150_v56, %v150_v56 }
  0xbc   :  { %3688 = vmatpush3.bf16.msra.mxu0 %v4000_v59  ;;  %v4041_v59 = vld [vmem:[%s5014_s1 + $0x7c0] sm:$0xff]  }
  0xbd   :  { %3710 = vmatpush3.bf16.msra.mxu1 %v4001_v61  ;;  %3689 = vmatprep.subr.bf16.mxu0 %v4002_v0  ;;  %v224_v61 = vpack.c.bf16 %v141_v44, %v141_v44  ;;  %v3146_v0 = vsel %vm3104_vm0, %v3036_v52, 0.0  ;;  %v4065_v44 = vld [vmem:[%s5014_s1 + $0x7f0] sm:$0xff]   ;;  %v23_v52 = vld [vmem:[%s5013_s0 + $0x38] sm:$0xff] }
  0xbe   :  { %3711 = vmatprep.subr.bf16.mxu1 %v4003_v1  ;;  %v226_v1 = vpack.c.bf16 %v148_v49, %v148_v49 }
  0xc0   :  { %3690 = vmatpush3.bf16.msra.mxu0 %v4004_v4  ;;  %v3147_v4 = vadd.f32 %v3146_v0, %v3145_v60 }
  0xc1   :  { %3712 = vmatpush3.bf16.msra.mxu1 %v4005_v5  ;;  %3719 = vmatprep.subr.bf16.mxu0 %v4007_v8  ;;  %v4046_v5 = vld [vmem:[%s5014_s1 + $0x708] sm:$0xff]   ;;  %v2926_v8 = vmul.f32 %v22_v40, %v22_v40  ;;  %v4064_v40 = vld [vmem:[%s5014_s1 + $0x770] sm:$0xff]  }
  0xc2   :  { %3741 = vmatprep.subr.bf16.mxu1 %v4008_v9  ;;  %v4047_v9 = vld [vmem:[%s5014_s1 + $0x788] sm:$0xff]  }
  0xc3   :  { %2713 = vmatmul.mubr.bf16.vlgmr.msra.gmra.mrb[20].mxu0 %v220_v12  ;;  %v4050_v12 = vld [vmem:[%s5014_s1 + $0x710] sm:$0xff]  }
  0xc4   :  { %2753 = vmatmul.mubr.bf16.vlgmr.msra.gmra.mrb[20].mxu1 %v222_v13  ;;  %3720 = vmatpush3.bf16.msra.mxu0 %v4009_v10  ;;  %v4048_v10 = vld [vmem:[%s5014_s1 + $0x750] sm:$0xff]   ;;  %v3149_v13 = vadd.f32 %v3148_v7, %v3147_v4 }
  0xc5   :  { %3742 = vmatpush3.bf16.msra.mxu1 %v4010_v14  ;;  %3721 = vmatprep.subr.bf16.mxu0 %v4011_v15  ;;  %v3045_v14 = vrot.slane %v2926_v8, %v4226_v41  ;;  %v4051_v15 = vld [vmem:[%s5014_s1 + $0x790] sm:$0xff]  }
  0xc6   :  { %3743 = vmatprep.subr.bf16.mxu1 %v4012_v16  ;;  %2792 = vmatprep.mubr.bf16.mxu0 %v225_v55  ;;  %v3150_v16 = vsel %vm3104_vm0, %v3037_v6, 0.0 }
  0xc7   :  { %2832 = vmatprep.mubr.bf16.mxu1 %v227_v58 }
  0xc8   :  { %3722 = vmatpush3.bf16.msra.mxu0 %v4013_v17  ;;  %v3038_v17 = vcombine.high %v2926_v8, %v2926_v8 }
  0xc9   :  { %3744 = vmatpush3.bf16.msra.mxu1 %v4014_v18  ;;  %3723 = vmatprep.subr.bf16.mxu0 %v4015_v19  ;;  %v4052_v18 = vld [vmem:[%s5014_s1 + $0x758] sm:$0xff]  }
  0xca   :  { %3745 = vmatprep.subr.bf16.mxu1 %v4016_v20  ;;  %v4053_v19 = vld [vmem:[%s5014_s1 + $0x7d8] sm:$0xff]  }
  0xcb   :  { %v4054_v20 = vld [vmem:[%s5014_s1 + $0x718] sm:$0xff]  }
  0xcc   :  { %3724 = vmatpush3.bf16.msra.mxu0 %v4017_v21  ;;  %v3151_v21 = vadd.f32 %v3150_v16, %v3149_v13 }
  0xcd   :  { %3746 = vmatpush3.bf16.msra.mxu1 %v4018_v22  ;;  %3725 = vmatprep.subr.bf16.mxu0 %v4019_v23  ;;  %v4055_v22 = vld [vmem:[%s5014_s1 + $0x798] sm:$0xff]   ;;  %v3053_v23 = vcombine.high %v3045_v14, %v3045_v14 }
  0xce   :  { %3747 = vmatprep.subr.bf16.mxu1 %v4020_v24  ;;  %v3152_v24 = vsel %vm3104_vm0, %v3045_v14, 0.0 }
  0xd0   :  { %3726 = vmatpush3.bf16.msra.mxu0 %v4021_v25  ;;  %v4056_v25 = vld [vmem:[%s5014_s1 + $0x760] sm:$0xff]  }
  0xd1   :  { %3748 = vmatpush3.bf16.msra.mxu1 %v4022_v26  ;;  %3727 = vmatprep.subr.bf16.mxu0 %v4023_v27  ;;  %v3052_v26 = vrot.slane %v3038_v17, %v4226_v41  ;;  %v4057_v27 = vld [vmem:[%s5014_s1 + $0x7e0] sm:$0xff]  }
  0xd2   :  { %3749 = vmatprep.subr.bf16.mxu1 %v4024_v28  ;;  %v4058_v28 = vld [vmem:[%s5014_s1 + $0x720] sm:$0xff]  }
  0xd4   :  { %3728 = vmatpush3.bf16.msra.mxu0 %v4025_v29  ;;  %v3153_v29 = vadd.f32 %v3152_v24, %v3151_v21 }
  0xd5   :  { %3750 = vmatpush3.bf16.msra.mxu1 %v4026_v30  ;;  %3729 = vmatprep.subr.bf16.mxu0 %v4027_v31  ;;  %v4059_v30 = vld [vmem:[%s5014_s1 + $0x7a0] sm:$0xff]   ;;  %v3154_v31 = vsel %vm3104_vm0, %v3053_v23, 0.0 }
  0xd6   :  { %3751 = vmatprep.subr.bf16.mxu1 %v4028_v32  ;;  %v4060_v32 = vld [vmem:[%s5014_s1 + $0x768] sm:$0xff]  }
  0xd8   :  { %3730 = vmatpush3.bf16.msra.mxu0 %v4029_v33  ;;  %v3054_v33 = vcombine.high %v3052_v26, %v3052_v26 }
  0xd9   :  { %3752 = vmatpush3.bf16.msra.mxu1 %v4030_v35  ;;  %3731 = vmatprep.subr.bf16.mxu0 %v4031_v36  ;;  %v4062_v35 = vld [vmem:[%s5014_s1 + $0x728] sm:$0xff]   ;;  %v3155_v36 = vadd.f32 %v3154_v31, %v3153_v29 }
  0xda   :  { %3753 = vmatprep.subr.bf16.mxu1 %v4032_v38  ;;  %v4063_v38 = vld [vmem:[%s5014_s1 + $0x7a8] sm:$0xff]   ;;  %v3158_v42 = vsel %vm3104_vm0, %v3054_v33, 0.0 }
  0xdc   :  { %3732 = vmatpush3.bf16.msra.mxu0 %v4033_v39  ;;  %v3156_v39 = vsel %vm3104_vm0, %v3052_v26, 0.0 }
  0xdd   :  { %3754 = vmatpush3.bf16.msra.mxu1 %v4034_v43  ;;  %3733 = vmatprep.subr.bf16.mxu0 %v4035_v46 }
  0xde   :  { %3755 = vmatprep.subr.bf16.mxu1 %v4036_v47  ;;  %v3157_v47 = vadd.f32 %v3156_v39, %v3155_v36 }
  0xe0   :  { %3734 = vmatpush3.bf16.msra.mxu0 %v4037_v51  ;;  %v4066_v51 = vld [vmem:[%s5014_s1 + $0x730] sm:$0xff]  }
  0xe1   :  { %3756 = vmatpush3.bf16.msra.mxu1 %v4038_v54  ;;  %3763 = vmatprep.subr.bf16.mxu0 %v4040_v57 }
  0xe2   :  { %3785 = vmatprep.subr.bf16.mxu1 %v4041_v59 }
  0xe3   :  { %2793 = vmatmul.mubr.bf16.vlgmr.msra.gmra.mrb[24].mxu0 %v224_v61 }
  0xe4   :  { %2833 = vmatmul.mubr.bf16.vlgmr.msra.gmra.mrb[24].mxu1 %v226_v1  ;;  %3764 = vmatpush3.bf16.msra.mxu0 %v4042_v62 }
  0xe5   :  { %3786 = vmatpush3.bf16.msra.mxu1 %v4043_v2  ;;  %3765 = vmatprep.subr.bf16.mxu0 %v4044_v37 }
  0xe6   :  { %3787 = vmatprep.subr.bf16.mxu1 %v4045_v3 }
  0xe8   :  { %3766 = vmatpush3.bf16.msra.mxu0 %v4046_v5 }
  0xe9   :  { %3788 = vmatpush3.bf16.msra.mxu1 %v4047_v9  ;;  %3767 = vmatprep.subr.bf16.mxu0 %v4048_v10 }
  0xea   :  { %3789 = vmatprep.subr.bf16.mxu1 %v4049_v11 }
  0xec   :  { %3768 = vmatpush3.bf16.msra.mxu0 %v4050_v12 }
  0xed   :  { %3790 = vmatpush3.bf16.msra.mxu1 %v4051_v15  ;;  %3769 = vmatprep.subr.bf16.mxu0 %v4052_v18 }
  0xee   :  { %3791 = vmatprep.subr.bf16.mxu1 %v4053_v19 }
  0xf0   :  { %3770 = vmatpush3.bf16.msra.mxu0 %v4054_v20 }
  0xf1   :  { %3792 = vmatpush3.bf16.msra.mxu1 %v4055_v22  ;;  %3771 = vmatprep.subr.bf16.mxu0 %v4056_v25 }
  0xf2   :  { %3793 = vmatprep.subr.bf16.mxu1 %v4057_v27 }
  0xf4   :  { %3772 = vmatpush3.bf16.msra.mxu0 %v4058_v28 }
  0xf5   :  { %3794 = vmatpush3.bf16.msra.mxu1 %v4059_v30  ;;  %3773 = vmatprep.subr.bf16.mxu0 %v4060_v32 }
  0xf6   :  { %v3471_v43 = vpop.f32.mrb[0].mxu0  ;;  %3795 = vmatprep.subr.bf16.mxu1 %v4061_v34 }
  0xf7   :  { %v3493_v45 = vpop.f32.mrb[0].mxu1  ;;  %v3472_v46 = vpop.f32.mrb[1].mxu0 }
  0xf8   :  { %v3473_v48 = vadd.f32 %v3472_v46, %v3471_v43  ;;  %v3494_v49 = vpop.f32.mrb[1].mxu1  ;;  %v3474_v50 = vpop.f32.mrb[2].mxu0  ;;  %3774 = vmatpush3.bf16.msra.mxu0 %v4062_v35 }
  0xf9   :  { %8 = vsyncpa [#allocation3], 0  ;;  %v3495_v53 = vadd.f32 %v3494_v49, %v3493_v45  ;;  %v3496_v54 = vpop.f32.mrb[2].mxu1  ;;  %3796 = vmatpush3.bf16.msra.mxu1 %v4063_v38  ;;  %v3475_v55 = vpop.f32.mrb[3].mxu0  ;;  %3775 = vmatprep.subr.bf16.mxu0 %v4064_v40  ;;  %v4067_v56 = vld [vmem:[%s5014_s1 + $0x7b0] sm:$0xff]   ;;  %v4068_v57 = vld [vmem:[%s5014_s1 + $0x778] sm:$0xff]   ;;  %v158_v58 = vrot.slane %v23_v52, %v4226_v41  ;;  %v151_v59 = vcombine.high %v23_v52, %v23_v52 }
  0xfa   :  { %v3497_v60 = vpop.f32.mrb[3].mxu1  ;;  %3797 = vmatprep.subr.bf16.mxu1 %v4065_v44  ;;  %v4069_v61 = vld [vmem:[%s5014_s1 + $0x7f8] sm:$0xff]   ;;  %v2927_v62 = vmul.f32 %v23_v52, %v23_v52  ;;  %v3159_v2 = vadd.f32 %v3158_v42, %v3157_v47  ;;  %s4100_s27 = smov [#allocation2]   ;;  %vm3182_vm1 = vcmask 517120  }
  0xfb   :  { %v2355_v63 = vadd.f32 %v3495_v53, %v3473_v48  ;;  %v166_v0 = vcombine.high %v158_v58, %v158_v58  ;;  %v165_v1 = vrot.slane %v151_v59, %v4226_v41  ;;  %v4070_v37 = vld [vmem:[%s5014_s1 + $0x738] sm:$0xff]   ;;  %v228_v12 = vpack.c.bf16 %v158_v58, %v158_v58  ;;  %s3190_s28 = sshll.u32 %s4100_s27, 4  ;;  %s3191_s28 = int_to_ptr.vmem [resolvable:$true] %s3190_s28 }
  0xfc   :  { %3776 = vmatpush3.bf16.msra.mxu0 %v4066_v51  ;;  %v3055_v3 = vcombine.high %v2927_v62, %v2927_v62  ;;  %v3062_v4 = vrot.slane %v2927_v62, %v4226_v41  ;;  %v4071_v5 = vld [vmem:[%s5014_s1 + $0x7b8] sm:$0xff]   ;;  %s4075_s29 = scalar_lea.vmem %s3191_s28, 32  ;;  %p4080_p1 = scmp.lt.s32.totalorder %s3191_s28, %s3191_s28 }
  0xfd   :  { %3798 = vmatpush3.bf16.msra.mxu1 %v4067_v56  ;;  %3777 = vmatprep.subr.bf16.mxu0 %v4068_v57  ;;  %v229_v6 = vpack.c.bf16 %v166_v0, %v166_v0  ;;  %v167_v7 = vcombine.high %v165_v1, %v165_v1  ;;  %v230_v14 = vpack.c.bf16 %v165_v1, %v165_v1  ;;  %p4076_p0 = scmp.ne.s32.totalorder %s3191_s28, %s4075_s29  ;;  %p4081_p2 = scmp.lt.s32.totalorder %s4075_s29, %s4075_s29 }
  0xfe   :  { %3799 = vmatprep.subr.bf16.mxu1 %v4069_v61  ;;  %v3069_v8 = vrot.slane %v3055_v3, %v4226_v41  ;;  %v3070_v9 = vcombine.high %v3062_v4, %v3062_v4  ;;  %v3160_v10 = vsel %vm3104_vm0, %v3062_v4, 0.0 }
  0xff   :  { %2872 = vmatprep.mubr.bf16.mxu0 %v229_v6  ;;  %v231_v11 = vpack.c.bf16 %v167_v7, %v167_v7  ;;  %v3161_v13 = vadd.f32 %v3160_v10, %v3159_v2  ;;  %p4082_p3 = por %p4081_p2, %p4080_p1 }
 0x100   :  { %3778 = vmatpush3.bf16.msra.mxu0 %v4070_v37  ;;  %v3071_v15 = vcombine.high %v3069_v8, %v3069_v8  ;;  %v3162_v16 = vsel %vm3104_vm0, %v3070_v9, 0.0  ;;  %v3164_v17 = vsel %vm3104_vm0, %v3069_v8, 0.0 }
 0x101   :  { %3800 = vmatpush3.bf16.msra.mxu1 %v4071_v5  ;;  %2912 = vmatprep.mubr.bf16.mxu1 %v231_v11  ;;  %v3163_v18 = vadd.f32 %v3162_v16, %v3161_v13  ;;  %p4083_p4 = pnand %p4082_p3, %p4076_p0 }
 0x102   :  { %v3166_v19 = vsel %vm3104_vm0, %v3071_v15, 0.0 }
 0x103   :  { %2873 = vmatmul.mubr.bf16.vlgmr.msra.gmra.mrb[28].mxu0 %v228_v12  ;;  %v3165_v41 = vadd.f32 %v3164_v17, %v3163_v18 }
 0x104   :  { %2913 = vmatmul.mubr.bf16.vlgmr.msra.gmra.mrb[28].mxu1 %v230_v14 }
 0x105   :  { %v3167_v20 = vadd.f32 %v3166_v19, %v3165_v41 }
 0x107   :  { %3168 = vadd.xlane.f32.xlu0 %v3167_v20 }
 0x116   :  { %v3515_v21 = vpop.f32.mrb[4].mxu0 }
 0x117   :  { %v3537_v22 = vpop.f32.mrb[4].mxu1  ;;  %v3516_v23 = vpop.f32.mrb[5].mxu0 }
 0x118   :  { %v3517_v24 = vadd.f32 %v3516_v23, %v3515_v21  ;;  %v3538_v25 = vpop.f32.mrb[5].mxu1  ;;  %v3518_v26 = vpop.f32.mrb[6].mxu0 }
 0x119   :  { %v3539_v27 = vadd.f32 %v3538_v25, %v3537_v22  ;;  %v3540_v28 = vpop.f32.mrb[6].mxu1  ;;  %v3519_v29 = vpop.f32.mrb[7].mxu0 }
 0x11a   :  { %v2395_v30 = vadd.f32 %v3517_v24, %v2355_v63  ;;  %v3541_v31 = vpop.f32.mrb[7].mxu1 }
 0x11c   :  { %v2435_v32 = vadd.f32 %v3539_v27, %v2395_v30 }
 0x136   :  { %v3559_v33 = vpop.f32.mrb[8].mxu0 }
 0x137   :  { %v3581_v34 = vpop.f32.mrb[8].mxu1  ;;  %v3560_v35 = vpop.f32.mrb[9].mxu0 }
 0x138   :  { %v3561_v36 = vadd.f32 %v3560_v35, %v3559_v33  ;;  %v3582_v38 = vpop.f32.mrb[9].mxu1  ;;  %v3562_v39 = vpop.f32.mrb[10].mxu0 }
 0x139   :  { %v3583_v40 = vadd.f32 %v3582_v38, %v3581_v34  ;;  %v3584_v42 = vpop.f32.mrb[10].mxu1  ;;  %v3563_v43 = vpop.f32.mrb[11].mxu0 }
 0x13a   :  { %v2475_v44 = vadd.f32 %v3561_v36, %v2435_v32  ;;  %v3585_v45 = vpop.f32.mrb[11].mxu1 }
 0x13c   :  { %v2515_v46 = vadd.f32 %v3583_v40, %v2475_v44 }
 0x156   :  { %v3603_v47 = vpop.f32.mrb[12].mxu0 }
 0x157   :  { %v3625_v48 = vpop.f32.mrb[12].mxu1  ;;  %v3604_v49 = vpop.f32.mrb[13].mxu0 }
 0x158   :  { %v3605_v50 = vadd.f32 %v3604_v49, %v3603_v47  ;;  %v3626_v51 = vpop.f32.mrb[13].mxu1  ;;  %v3606_v52 = vpop.f32.mrb[14].mxu0 }
 0x159   :  { %v3627_v53 = vadd.f32 %v3626_v51, %v3625_v48  ;;  %v3628_v54 = vpop.f32.mrb[14].mxu1  ;;  %v3607_v55 = vpop.f32.mrb[15].mxu0 }
 0x15a   :  { %v2555_v56 = vadd.f32 %v3605_v50, %v2515_v46  ;;  %v3629_v57 = vpop.f32.mrb[15].mxu1  ;;  %v3454_v46 = vld [vmem:[%s5015_s2] ss:$0 sm:$0xff] }
 0x15c   :  { %v2595_v58 = vadd.f32 %v3627_v53, %v2555_v56 }
 0x176   :  { %v3647_v59 = vpop.f32.mrb[16].mxu0 }
 0x177   :  { %v3669_v60 = vpop.f32.mrb[16].mxu1  ;;  %v3648_v61 = vpop.f32.mrb[17].mxu0 }
 0x178   :  { %v3649_v62 = vadd.f32 %v3648_v61, %v3647_v59  ;;  %v3670_v63 = vpop.f32.mrb[17].mxu1  ;;  %v3650_v0 = vpop.f32.mrb[18].mxu0 }
 0x179   :  { %v3671_v1 = vadd.f32 %v3670_v63, %v3669_v60  ;;  %v3672_v2 = vpop.f32.mrb[18].mxu1  ;;  %v3651_v37 = vpop.f32.mrb[19].mxu0 }
 0x17a   :  { %v2635_v3 = vadd.f32 %v3649_v62, %v2595_v58  ;;  %v3673_v4 = vpop.f32.mrb[19].mxu1 }
 0x17c   :  { %v2675_v5 = vadd.f32 %v3671_v1, %v2635_v3 }
 0x194   :  { %v3169_v29 = vpop.xlane.xlu0 %3168 }
 0x195   :  { %4073 = vrsqrt.f32 %v3169_v29 }
 0x196   :  { %v3691_v6 = vpop.f32.mrb[20].mxu0 }
 0x197   :  { %v3713_v7 = vpop.f32.mrb[20].mxu1  ;;  %v3692_v8 = vpop.f32.mrb[21].mxu0 }
 0x198   :  { %v3693_v9 = vadd.f32 %v3692_v8, %v3691_v6  ;;  %v3714_v10 = vpop.f32.mrb[21].mxu1  ;;  %v3694_v11 = vpop.f32.mrb[22].mxu0 }
 0x199   :  { %v3715_v12 = vadd.f32 %v3714_v10, %v3713_v7  ;;  %v3716_v13 = vpop.f32.mrb[22].mxu1  ;;  %v3695_v14 = vpop.f32.mrb[23].mxu0 }
 0x19a   :  { %v2715_v15 = vadd.f32 %v3693_v9, %v2675_v5  ;;  %v3717_v16 = vpop.f32.mrb[23].mxu1 }
 0x19c   :  { %v2755_v17 = vadd.f32 %v3715_v12, %v2715_v15 }
 0x19f   :  { %v4074_v31 = vpop.eup %4073 }
 0x1a0   :  { %v3171_v42 = vmin.f32 %v4074_v31, 1e+12 }
 0x1b6   :  { %v3735_v18 = vpop.f32.mrb[24].mxu0 }
 0x1b7   :  { %v3757_v19 = vpop.f32.mrb[24].mxu1  ;;  %v3736_v41 = vpop.f32.mrb[25].mxu0 }
 0x1b8   :  { %v3737_v20 = vadd.f32 %v3736_v41, %v3735_v18  ;;  %v3758_v21 = vpop.f32.mrb[25].mxu1  ;;  %v3738_v22 = vpop.f32.mrb[26].mxu0 }
 0x1b9   :  { %v3759_v23 = vadd.f32 %v3758_v21, %v3757_v19  ;;  %v3760_v24 = vpop.f32.mrb[26].mxu1  ;;  %v3739_v25 = vpop.f32.mrb[27].mxu0 }
 0x1ba   :  { %v2795_v26 = vadd.f32 %v3737_v20, %v2755_v17  ;;  %v3761_v27 = vpop.f32.mrb[27].mxu1 }
 0x1bc   :  { %v2835_v28 = vadd.f32 %v3759_v23, %v2795_v26 }
 0x1d6   :  { %v3779_v30 = vpop.f32.mrb[28].mxu0 }
 0x1d7   :  { %v3801_v32 = vpop.f32.mrb[28].mxu1  ;;  %v3780_v33 = vpop.f32.mrb[29].mxu0 }
 0x1d8   :  { %v3781_v34 = vadd.f32 %v3780_v33, %v3779_v30  ;;  %v3802_v35 = vpop.f32.mrb[29].mxu1  ;;  %v3782_v36 = vpop.f32.mrb[30].mxu0 }
 0x1d9   :  { %v3803_v38 = vadd.f32 %v3802_v35, %v3801_v32  ;;  %v3804_v39 = vpop.f32.mrb[30].mxu1  ;;  %v3783_v40 = vpop.f32.mrb[31].mxu0 }
 0x1da   :  { %v2875_v43 = vadd.f32 %v3781_v34, %v2835_v28  ;;  %v3805_v44 = vpop.f32.mrb[31].mxu1 }
 0x1dc   :  { %v2915_v45 = vadd.f32 %v3803_v38, %v2875_v43 }
 0x1de   :  { %v3172_v47 = vmul.f32 %v3171_v42, %v2915_v45 }
 0x1e0   :  { %v3180_v48 = vadd.f32 %v3454_v46, %v3172_v47 }
 0x1e2   :  { %v3181_v49 = vmul.f32 20.0, %v3180_v48 }
 0x1e4   :  { %3183 = vst.msk [vmem:[#allocation2] sm:$0x3] %vm3182_vm1, %v3181_v49 }
 0x1e5   :  { %4086 = shalt.err (!%p4083_p4)
}
 0x1e6   :  { %s4087_s5 = scalar_lea.hbm %s5016_s3, 32 }
 0x1e7   :  { %p4088_p5 = scmp.ne.s32.totalorder %s5016_s3, %s4087_s5  ;;  %p4091_p6 = scmp.lt.u32.totalorder %s4087_s5, %s5016_s3 }
 0x1e9   :  { %p4093_p7 = pnand %p4091_p6, %p4088_p5 }
 0x1eb   :  { %4096 = shalt.err (!%p4093_p7)
}
 0x1ec   :  { %3193 = dma.vmem_to_hbm [thread:$0]  %s3191_s28, 32, %s5016_s3, [#allocation3]  }
 0x1ed   :  { %4097 = dma.done.wait [#allocation3], 32  }
 0x1ee   :  { %4098 = vsyncadd [#allocation3], 4294967264 }
 0x1ef   :  { %3197 = vsyncpa [#allocation3], 1 }

</bundles_post_ra>
